<compile_context>
chip_gen: v6e
topology: v6e:2x2x1
jax: 0.10.0
libtpu: 0.0.40
codegen_flags: <defaults>
</compile_context>

<pallas_src>
import math

import jax
import jax.numpy as jnp
from jax import lax
from jax.experimental import pallas as pl
from jax.experimental.pallas import tpu as pltpu

EP = 1.0                          # kernels.Wendland_order_0(ep=1)
_UNROLL_M = 32                    # static Python unroll while nr_centers <= this
_LANE_SWITCH_F = 128              # features-on-lanes layout only once F fills the lanes
_MAX_TILE_ROWS = 2048             # row-tile cap, features-on-lanes layout (sublane axis)
_MAX_TILE_LANES = 16384           # row-tile cap, rows-on-lanes layout (lane axis)
_VMEM_BUDGET = 8 * 1024 * 1024    # bytes for the double-buffered streamed slabs


def _wendland(d):
    """Wendland order-0 RBF: max(1 - ep*d, 0). EP == 1.0 -> multiply dropped at trace time."""
    t = 1.0 - d if EP == 1.0 else 1.0 - EP * d
    return jnp.maximum(t, 0.0)


# ---------------------------------------------------------------------------
# Layout A: features on lanes (used when F >= 128).
#   rows_ref : (TILE_B, F)   streamed row tile
#   c_ref    : (M, F)        centers, resident for the whole grid
#   w_ref    : (M, F)        weight.T, resident for the whole grid
#   out_ref  : (TILE_B, F)
# ---------------------------------------------------------------------------
def _activfunc_feats_on_lanes_kernel(rows_ref, c_ref, w_ref, out_ref):
    x = rows_ref[...].astype(jnp.float32)          # (TILE_B, F)
    M = c_ref.shape[0]

    def contrib(cm, wm):
        # cm, wm: (F,) -> broadcast over rows (sublanes); stays on the VPU.
        return _wendland(jnp.abs(x - cm)) * wm

    if M <= _UNROLL_M:
        acc = jnp.zeros(x.shape, jnp.float32)
        for m in range(M):                          # static unroll, small M
            acc = acc + contrib(c_ref[m, :].astype(jnp.float32),
                                w_ref[m, :].astype(jnp.float32))
    else:
        def body(m, acc):                           # dynamic sublane index into resident refs
            return acc + contrib(c_ref[m, :].astype(jnp.float32),
                                 w_ref[m, :].astype(jnp.float32))
        acc = lax.fori_loop(0, M, body, jnp.zeros(x.shape, jnp.float32), unroll=8)

    out_ref[...] = acc.astype(out_ref.dtype)


# ---------------------------------------------------------------------------
# Layout B: rows on lanes (used when F < 128) -> lane-dense compute & stores.
#   rows_ref : (F, TILE_B)   streamed (transposed) row tile
#   c_ref    : (F, M)        centers.T, resident
#   w_ref    : (F, M)        weight (original layout), resident
#   out_ref  : (F, TILE_B)
# ---------------------------------------------------------------------------
def _activfunc_rows_on_lanes_kernel(rows_ref, c_ref, w_ref, out_ref):
    x = rows_ref[...].astype(jnp.float32)          # (F, TILE_B)
    F, M = c_ref.shape
    c = c_ref[...].astype(jnp.float32)             # (F, M), tiny, loaded once
    w = w_ref[...].astype(jnp.float32)             # (F, M)

    def contrib(cm, wm):
        # cm, wm: (F, 1) -> broadcast over rows (lanes); stays on the VPU.
        return _wendland(jnp.abs(x - cm)) * wm

    if M <= _UNROLL_M:
        acc = jnp.zeros(x.shape, jnp.float32)
        for m in range(M):                          # static unroll, small M
            acc = acc + contrib(c[:, m:m + 1], w[:, m:m + 1])
    else:
        # Pick column m with an iota mask + lane reduce (XLU slot) instead of a dynamic
        # lane slice -- robust lowering, and XLU work is hidden under the VALU-bound loop.
        lane_ids = lax.broadcasted_iota(jnp.int32, (F, M), 1)

        def body(m, acc):
            sel = lane_ids == m
            cm = jnp.sum(jnp.where(sel, c, 0.0), axis=1, keepdims=True)   # (F, 1)
            wm = jnp.sum(jnp.where(sel, w, 0.0), axis=1, keepdims=True)   # (F, 1)
            return acc + contrib(cm, wm)

        acc = lax.fori_loop(0, M, body, jnp.zeros(x.shape, jnp.float32), unroll=8)

    out_ref[...] = acc.astype(out_ref.dtype)


# ---------------------------------------------------------------------------
# pallas_call wrappers
# ---------------------------------------------------------------------------
def _apply_feats_on_lanes(rows, centers, wt):
    """rows: (B, F), centers: (M, F), wt = weight.T: (M, F) -> (B, F)."""
    B, F = rows.shape
    M = centers.shape[0]
    itemsize = jnp.dtype(rows.dtype).itemsize

    tile = _VMEM_BUDGET // max(1, 4 * F * itemsize)   # 2 streamed slabs x 2 buffers
    tile = max(8, min(tile, _MAX_TILE_ROWS))
    tile = (tile // 8) * 8
    if tile >= B:
        tile = B                                      # single full-extent block

    return pl.pallas_call(
        _activfunc_feats_on_lanes_kernel,
        out_shape=jax.ShapeDtypeStruct((B, F), rows.dtype),
        grid=(pl.cdiv(B, tile),),
        in_specs=[
            pl.BlockSpec((tile, F), lambda i: (i, 0)),    # streamed row tile
            pl.BlockSpec((M, F), lambda i: (0, 0)),       # resident centers
            pl.BlockSpec((M, F), lambda i: (0, 0)),       # resident weight.T
        ],
        out_specs=pl.BlockSpec((tile, F), lambda i: (i, 0)),
        compiler_params=pltpu.CompilerParams(
            dimension_semantics=("parallel",),
            vmem_limit_bytes=32 * 1024 * 1024,
        ),
    )(rows, centers, wt)


def _apply_rows_on_lanes(rows_t, centers_t, weight):
    """rows_t: (F, B), centers_t: (F, M), weight: (F, M) -> (F, B)."""
    F, B = rows_t.shape
    M = centers_t.shape[1]
    itemsize = jnp.dtype(rows_t.dtype).itemsize

    tile = _VMEM_BUDGET // max(1, 4 * F * itemsize)   # 2 streamed slabs x 2 buffers
    tile = max(128, min(tile, _MAX_TILE_LANES))
    tile = (tile // 128) * 128
    if tile >= B:
        tile = B                                      # single full-extent block

    return pl.pallas_call(
        _activfunc_rows_on_lanes_kernel,
        out_shape=jax.ShapeDtypeStruct((F, B), rows_t.dtype),
        grid=(pl.cdiv(B, tile),),
        in_specs=[
            pl.BlockSpec((F, tile), lambda i: (0, i)),    # streamed (transposed) row tile
            pl.BlockSpec((F, M), lambda i: (0, 0)),       # resident centers.T
            pl.BlockSpec((F, M), lambda i: (0, 0)),       # resident weight
        ],
        out_specs=pl.BlockSpec((F, tile), lambda i: (0, i)),
        compiler_params=pltpu.CompilerParams(
            dimension_semantics=("parallel",),
            vmem_limit_bytes=32 * 1024 * 1024,
        ),
    )(rows_t, centers_t, weight)


@jax.jit
def activ_func(x, centers, weight):
    """x: (N, F), centers: (M, F), weight: (F, M) -> (x_out (N, F), centers_out (M, F))."""
    F = x.shape[1]
    if F >= _LANE_SWITCH_F:
        # Features already fill the 128 lanes: keep (rows, features) layout.
        wt = weight.T                                        # (M, F)
        x_out = _apply_feats_on_lanes(x, centers, wt)        # rows = x
        centers_out = _apply_feats_on_lanes(centers, centers, wt)  # rows = cat()'s first half
    else:
        # Small F: run lane-dense in transposed (features, rows) layout.
        x_t = x.T                                            # (F, N)
        c_t = centers.T                                      # (F, M)
        x_out = _apply_rows_on_lanes(x_t, c_t, weight).T
        centers_out = _apply_rows_on_lanes(c_t, c_t, weight).T
    return x_out, centers_out


def init_weight(key, in_features, nr_centers):
    """Deterministic replica of reset_parameters():
    kaiming_uniform_(a=sqrt(5)) on (in_features, nr_centers) (fan_in = nr_centers), then += 0.2."""
    gain = math.sqrt(2.0 / (1.0 + 5.0))          # leaky_relu gain with a = sqrt(5)
    bound = gain * math.sqrt(3.0 / nr_centers)   # = 1 / sqrt(fan_in)
    w = jax.random.uniform(key, (in_features, nr_centers), jnp.float32, -bound, bound)
    return w + 0.2


if __name__ == "__main__":
    in_features, nr_centers, batch = 4, 5, 8

    key = jax.random.PRNGKey(0)
    kx, kc, kw = jax.random.split(key, 3)
    x = jax.random.normal(kx, (batch, in_features), dtype=jnp.float32)
    centers = jax.random.normal(kc, (nr_centers, in_features), dtype=jnp.float32)
    weight = init_weight(kw, in_features, nr_centers)

    x_out, c_out = activ_func(x, centers, weight)
    jax.block_until_ready((x_out, c_out))

    # pure-JAX reference (mirrors the PyTorch forward exactly)
    cx = jnp.concatenate([centers, x], axis=0)                    # (M+N, F)
    dist = jnp.abs(cx[:, :, None] - centers.T[None, :, :])        # (M+N, F, M)
    kmat = jnp.maximum(1.0 - EP * dist, 0.0)
    ref = jnp.sum(kmat * weight[None, :, :], axis=2)              # (M+N, F)
    assert jnp.allclose(x_out, ref[nr_centers:], atol=1e-5, rtol=1e-5)
    assert jnp.allclose(c_out, ref[:nr_centers], atol=1e-5, rtol=1e-5)

    print("KERNEL_OK")
</pallas_src>

<mosaic_0001>
module attributes {stable_mosaic.version = 11 : i64} {
  func.func @_activfunc_rows_on_lanes_kernel(%arg0: i32, %arg1: memref<4x8xf32, #tpu.memory_space<vmem>>, %arg2: memref<4x5xf32, #tpu.memory_space<vmem>>, %arg3: memref<4x5xf32, #tpu.memory_space<vmem>>, %arg4: memref<4x8xf32, #tpu.memory_space<vmem>>) attributes {dimension_semantics = [#tpu.dimension_semantics<parallel>], iteration_bounds = array<i64: 1>, scalar_prefetch = 0 : i64, scratch_operands = 0 : i64, tpu.core_type = #tpu.core_type<tc>, window_params = [{transform_indices = @transform_0, window_bounds = array<i64: 4, 8>}, {pipeline_mode = #tpu.pipeline_mode<synchronous>, transform_indices = @transform_1, window_bounds = array<i64: 4, 5>}, {pipeline_mode = #tpu.pipeline_mode<synchronous>, transform_indices = @transform_2, window_bounds = array<i64: 4, 5>}, {transform_indices = @transform_3, window_bounds = array<i64: 4, 8>}]} {
    %c0 = arith.constant 0 : index
    %c0_0 = arith.constant 0 : index
    %0 = vector.load %arg1[%c0, %c0_0] : memref<4x8xf32, #tpu.memory_space<vmem>>, vector<4x8xf32>
    %c0_1 = arith.constant 0 : index
    %c0_2 = arith.constant 0 : index
    %1 = vector.load %arg2[%c0_1, %c0_2] : memref<4x5xf32, #tpu.memory_space<vmem>>, vector<4x5xf32>
    %c0_3 = arith.constant 0 : index
    %c0_4 = arith.constant 0 : index
    %2 = vector.load %arg3[%c0_3, %c0_4] : memref<4x5xf32, #tpu.memory_space<vmem>>, vector<4x5xf32>
    %cst = arith.constant 0.000000e+00 : f32
    %3 = vector.broadcast %cst : f32 to vector<4x8xf32>
    %4 = vector.extract_strided_slice %1 {offsets = [0, 0], sizes = [4, 1], strides = [1, 1]} : vector<4x5xf32> to vector<4x1xf32>
    %5 = vector.extract_strided_slice %2 {offsets = [0, 0], sizes = [4, 1], strides = [1, 1]} : vector<4x5xf32> to vector<4x1xf32>
    %6 = vector.broadcast %4 : vector<4x1xf32> to vector<4x8xf32>
    %7 = arith.subf %0, %6 : vector<4x8xf32>
    %8 = math.absf %7 : vector<4x8xf32>
    %cst_5 = arith.constant 1.000000e+00 : f32
    %9 = vector.broadcast %cst_5 : f32 to vector<4x8xf32>
    %10 = arith.subf %9, %8 : vector<4x8xf32>
    %cst_6 = arith.constant 0.000000e+00 : f32
    %11 = vector.broadcast %cst_6 : f32 to vector<4x8xf32>
    %12 = arith.maximumf %10, %11 : vector<4x8xf32>
    %13 = vector.broadcast %5 : vector<4x1xf32> to vector<4x8xf32>
    %14 = arith.mulf %12, %13 : vector<4x8xf32>
    %15 = arith.addf %3, %14 : vector<4x8xf32>
    %16 = vector.extract_strided_slice %1 {offsets = [0, 1], sizes = [4, 1], strides = [1, 1]} : vector<4x5xf32> to vector<4x1xf32>
    %17 = vector.extract_strided_slice %2 {offsets = [0, 1], sizes = [4, 1], strides = [1, 1]} : vector<4x5xf32> to vector<4x1xf32>
    %18 = vector.broadcast %16 : vector<4x1xf32> to vector<4x8xf32>
    %19 = arith.subf %0, %18 : vector<4x8xf32>
    %20 = math.absf %19 : vector<4x8xf32>
    %cst_7 = arith.constant 1.000000e+00 : f32
    %21 = vector.broadcast %cst_7 : f32 to vector<4x8xf32>
    %22 = arith.subf %21, %20 : vector<4x8xf32>
    %cst_8 = arith.constant 0.000000e+00 : f32
    %23 = vector.broadcast %cst_8 : f32 to vector<4x8xf32>
    %24 = arith.maximumf %22, %23 : vector<4x8xf32>
    %25 = vector.broadcast %17 : vector<4x1xf32> to vector<4x8xf32>
    %26 = arith.mulf %24, %25 : vector<4x8xf32>
    %27 = arith.addf %15, %26 : vector<4x8xf32>
    %28 = vector.extract_strided_slice %1 {offsets = [0, 2], sizes = [4, 1], strides = [1, 1]} : vector<4x5xf32> to vector<4x1xf32>
    %29 = vector.extract_strided_slice %2 {offsets = [0, 2], sizes = [4, 1], strides = [1, 1]} : vector<4x5xf32> to vector<4x1xf32>
    %30 = vector.broadcast %28 : vector<4x1xf32> to vector<4x8xf32>
    %31 = arith.subf %0, %30 : vector<4x8xf32>
    %32 = math.absf %31 : vector<4x8xf32>
    %cst_9 = arith.constant 1.000000e+00 : f32
    %33 = vector.broadcast %cst_9 : f32 to vector<4x8xf32>
    %34 = arith.subf %33, %32 : vector<4x8xf32>
    %cst_10 = arith.constant 0.000000e+00 : f32
    %35 = vector.broadcast %cst_10 : f32 to vector<4x8xf32>
    %36 = arith.maximumf %34, %35 : vector<4x8xf32>
    %37 = vector.broadcast %29 : vector<4x1xf32> to vector<4x8xf32>
    %38 = arith.mulf %36, %37 : vector<4x8xf32>
    %39 = arith.addf %27, %38 : vector<4x8xf32>
    %40 = vector.extract_strided_slice %1 {offsets = [0, 3], sizes = [4, 1], strides = [1, 1]} : vector<4x5xf32> to vector<4x1xf32>
    %41 = vector.extract_strided_slice %2 {offsets = [0, 3], sizes = [4, 1], strides = [1, 1]} : vector<4x5xf32> to vector<4x1xf32>
    %42 = vector.broadcast %40 : vector<4x1xf32> to vector<4x8xf32>
    %43 = arith.subf %0, %42 : vector<4x8xf32>
    %44 = math.absf %43 : vector<4x8xf32>
    %cst_11 = arith.constant 1.000000e+00 : f32
    %45 = vector.broadcast %cst_11 : f32 to vector<4x8xf32>
    %46 = arith.subf %45, %44 : vector<4x8xf32>
    %cst_12 = arith.constant 0.000000e+00 : f32
    %47 = vector.broadcast %cst_12 : f32 to vector<4x8xf32>
    %48 = arith.maximumf %46, %47 : vector<4x8xf32>
    %49 = vector.broadcast %41 : vector<4x1xf32> to vector<4x8xf32>
    %50 = arith.mulf %48, %49 : vector<4x8xf32>
    %51 = arith.addf %39, %50 : vector<4x8xf32>
    %52 = vector.extract_strided_slice %1 {offsets = [0, 4], sizes = [4, 1], strides = [1, 1]} : vector<4x5xf32> to vector<4x1xf32>
    %53 = vector.extract_strided_slice %2 {offsets = [0, 4], sizes = [4, 1], strides = [1, 1]} : vector<4x5xf32> to vector<4x1xf32>
    %54 = vector.broadcast %52 : vector<4x1xf32> to vector<4x8xf32>
    %55 = arith.subf %0, %54 : vector<4x8xf32>
    %56 = math.absf %55 : vector<4x8xf32>
    %cst_13 = arith.constant 1.000000e+00 : f32
    %57 = vector.broadcast %cst_13 : f32 to vector<4x8xf32>
    %58 = arith.subf %57, %56 : vector<4x8xf32>
    %cst_14 = arith.constant 0.000000e+00 : f32
    %59 = vector.broadcast %cst_14 : f32 to vector<4x8xf32>
    %60 = arith.maximumf %58, %59 : vector<4x8xf32>
    %61 = vector.broadcast %53 : vector<4x1xf32> to vector<4x8xf32>
    %62 = arith.mulf %60, %61 : vector<4x8xf32>
    %63 = arith.addf %51, %62 : vector<4x8xf32>
    %c0_15 = arith.constant 0 : index
    %c0_16 = arith.constant 0 : index
    %64 = vector.load %arg4[%c0_15, %c0_16] : memref<4x8xf32, #tpu.memory_space<vmem>>, vector<4x8xf32>
    tpu.vector_store %arg4[%c0_15, %c0_16], %63 {strides = array<i32>} : memref<4x8xf32, #tpu.memory_space<vmem>>, vector<4x8xf32>,
    return
  }
  func.func @transform_0(%arg0: i32) -> (i32, i32) {
    %c0_i32 = arith.constant 0 : i32
    %c0_i32_0 = arith.constant 0 : i32
    return %c0_i32, %arg0 : i32, i32
  }
  func.func @transform_1(%arg0: i32) -> (i32, i32) {
    %c0_i32 = arith.constant 0 : i32
    %c0_i32_0 = arith.constant 0 : i32
    %c0_i32_1 = arith.constant 0 : i32
    return %c0_i32, %c0_i32_0 : i32, i32
  }
  func.func @transform_2(%arg0: i32) -> (i32, i32) {
    %c0_i32 = arith.constant 0 : i32
    %c0_i32_0 = arith.constant 0 : i32
    %c0_i32_1 = arith.constant 0 : i32
    return %c0_i32, %c0_i32_0 : i32, i32
  }
  func.func @transform_3(%arg0: i32) -> (i32, i32) {
    %c0_i32 = arith.constant 0 : i32
    %c0_i32_0 = arith.constant 0 : i32
    return %c0_i32, %arg0 : i32, i32
  }
}

module attributes {stable_mosaic.version = 11 : i64} {
  func.func @_activfunc_rows_on_lanes_kernel(%arg0: i32, %arg1: memref<4x5xf32, #tpu.memory_space<vmem>>, %arg2: memref<4x5xf32, #tpu.memory_space<vmem>>, %arg3: memref<4x5xf32, #tpu.memory_space<vmem>>, %arg4: memref<4x5xf32, #tpu.memory_space<vmem>>) attributes {dimension_semantics = [#tpu.dimension_semantics<parallel>], iteration_bounds = array<i64: 1>, scalar_prefetch = 0 : i64, scratch_operands = 0 : i64, tpu.core_type = #tpu.core_type<tc>, window_params = [{transform_indices = @transform_0, window_bounds = array<i64: 4, 5>}, {pipeline_mode = #tpu.pipeline_mode<synchronous>, transform_indices = @transform_1, window_bounds = array<i64: 4, 5>}, {pipeline_mode = #tpu.pipeline_mode<synchronous>, transform_indices = @transform_2, window_bounds = array<i64: 4, 5>}, {transform_indices = @transform_3, window_bounds = array<i64: 4, 5>}]} {
    %c0 = arith.constant 0 : index
    %c0_0 = arith.constant 0 : index
    %0 = vector.load %arg1[%c0, %c0_0] : memref<4x5xf32, #tpu.memory_space<vmem>>, vector<4x5xf32>
    %c0_1 = arith.constant 0 : index
    %c0_2 = arith.constant 0 : index
    %1 = vector.load %arg2[%c0_1, %c0_2] : memref<4x5xf32, #tpu.memory_space<vmem>>, vector<4x5xf32>
    %c0_3 = arith.constant 0 : index
    %c0_4 = arith.constant 0 : index
    %2 = vector.load %arg3[%c0_3, %c0_4] : memref<4x5xf32, #tpu.memory_space<vmem>>, vector<4x5xf32>
    %cst = arith.constant 0.000000e+00 : f32
    %3 = vector.broadcast %cst : f32 to vector<4x5xf32>
    %4 = vector.extract_strided_slice %1 {offsets = [0, 0], sizes = [4, 1], strides = [1, 1]} : vector<4x5xf32> to vector<4x1xf32>
    %5 = vector.extract_strided_slice %2 {offsets = [0, 0], sizes = [4, 1], strides = [1, 1]} : vector<4x5xf32> to vector<4x1xf32>
    %6 = vector.broadcast %4 : vector<4x1xf32> to vector<4x5xf32>
    %7 = arith.subf %0, %6 : vector<4x5xf32>
    %8 = math.absf %7 : vector<4x5xf32>
    %cst_5 = arith.constant 1.000000e+00 : f32
    %9 = vector.broadcast %cst_5 : f32 to vector<4x5xf32>
    %10 = arith.subf %9, %8 : vector<4x5xf32>
    %cst_6 = arith.constant 0.000000e+00 : f32
    %11 = vector.broadcast %cst_6 : f32 to vector<4x5xf32>
    %12 = arith.maximumf %10, %11 : vector<4x5xf32>
    %13 = vector.broadcast %5 : vector<4x1xf32> to vector<4x5xf32>
    %14 = arith.mulf %12, %13 : vector<4x5xf32>
    %15 = arith.addf %3, %14 : vector<4x5xf32>
    %16 = vector.extract_strided_slice %1 {offsets = [0, 1], sizes = [4, 1], strides = [1, 1]} : vector<4x5xf32> to vector<4x1xf32>
    %17 = vector.extract_strided_slice %2 {offsets = [0, 1], sizes = [4, 1], strides = [1, 1]} : vector<4x5xf32> to vector<4x1xf32>
    %18 = vector.broadcast %16 : vector<4x1xf32> to vector<4x5xf32>
    %19 = arith.subf %0, %18 : vector<4x5xf32>
    %20 = math.absf %19 : vector<4x5xf32>
    %cst_7 = arith.constant 1.000000e+00 : f32
    %21 = vector.broadcast %cst_7 : f32 to vector<4x5xf32>
    %22 = arith.subf %21, %20 : vector<4x5xf32>
    %cst_8 = arith.constant 0.000000e+00 : f32
    %23 = vector.broadcast %cst_8 : f32 to vector<4x5xf32>
    %24 = arith.maximumf %22, %23 : vector<4x5xf32>
    %25 = vector.broadcast %17 : vector<4x1xf32> to vector<4x5xf32>
    %26 = arith.mulf %24, %25 : vector<4x5xf32>
    %27 = arith.addf %15, %26 : vector<4x5xf32>
    %28 = vector.extract_strided_slice %1 {offsets = [0, 2], sizes = [4, 1], strides = [1, 1]} : vector<4x5xf32> to vector<4x1xf32>
    %29 = vector.extract_strided_slice %2 {offsets = [0, 2], sizes = [4, 1], strides = [1, 1]} : vector<4x5xf32> to vector<4x1xf32>
    %30 = vector.broadcast %28 : vector<4x1xf32> to vector<4x5xf32>
    %31 = arith.subf %0, %30 : vector<4x5xf32>
    %32 = math.absf %31 : vector<4x5xf32>
    %cst_9 = arith.constant 1.000000e+00 : f32
    %33 = vector.broadcast %cst_9 : f32 to vector<4x5xf32>
    %34 = arith.subf %33, %32 : vector<4x5xf32>
    %cst_10 = arith.constant 0.000000e+00 : f32
    %35 = vector.broadcast %cst_10 : f32 to vector<4x5xf32>
    %36 = arith.maximumf %34, %35 : vector<4x5xf32>
    %37 = vector.broadcast %29 : vector<4x1xf32> to vector<4x5xf32>
    %38 = arith.mulf %36, %37 : vector<4x5xf32>
    %39 = arith.addf %27, %38 : vector<4x5xf32>
    %40 = vector.extract_strided_slice %1 {offsets = [0, 3], sizes = [4, 1], strides = [1, 1]} : vector<4x5xf32> to vector<4x1xf32>
    %41 = vector.extract_strided_slice %2 {offsets = [0, 3], sizes = [4, 1], strides = [1, 1]} : vector<4x5xf32> to vector<4x1xf32>
    %42 = vector.broadcast %40 : vector<4x1xf32> to vector<4x5xf32>
    %43 = arith.subf %0, %42 : vector<4x5xf32>
    %44 = math.absf %43 : vector<4x5xf32>
    %cst_11 = arith.constant 1.000000e+00 : f32
    %45 = vector.broadcast %cst_11 : f32 to vector<4x5xf32>
    %46 = arith.subf %45, %44 : vector<4x5xf32>
    %cst_12 = arith.constant 0.000000e+00 : f32
    %47 = vector.broadcast %cst_12 : f32 to vector<4x5xf32>
    %48 = arith.maximumf %46, %47 : vector<4x5xf32>
    %49 = vector.broadcast %41 : vector<4x1xf32> to vector<4x5xf32>
    %50 = arith.mulf %48, %49 : vector<4x5xf32>
    %51 = arith.addf %39, %50 : vector<4x5xf32>
    %52 = vector.extract_strided_slice %1 {offsets = [0, 4], sizes = [4, 1], strides = [1, 1]} : vector<4x5xf32> to vector<4x1xf32>
    %53 = vector.extract_strided_slice %2 {offsets = [0, 4], sizes = [4, 1], strides = [1, 1]} : vector<4x5xf32> to vector<4x1xf32>
    %54 = vector.broadcast %52 : vector<4x1xf32> to vector<4x5xf32>
    %55 = arith.subf %0, %54 : vector<4x5xf32>
    %56 = math.absf %55 : vector<4x5xf32>
    %cst_13 = arith.constant 1.000000e+00 : f32
    %57 = vector.broadcast %cst_13 : f32 to vector<4x5xf32>
    %58 = arith.subf %57, %56 : vector<4x5xf32>
    %cst_14 = arith.constant 0.000000e+00 : f32
    %59 = vector.broadcast %cst_14 : f32 to vector<4x5xf32>
    %60 = arith.maximumf %58, %59 : vector<4x5xf32>
    %61 = vector.broadcast %53 : vector<4x1xf32> to vector<4x5xf32>
    %62 = arith.mulf %60, %61 : vector<4x5xf32>
    %63 = arith.addf %51, %62 : vector<4x5xf32>
    %c0_15 = arith.constant 0 : index
    %c0_16 = arith.constant 0 : index
    %64 = vector.load %arg4[%c0_15, %c0_16] : memref<4x5xf32, #tpu.memory_space<vmem>>, vector<4x5xf32>
    tpu.vector_store %arg4[%c0_15, %c0_16], %63 {strides = array<i32>} : memref<4x5xf32, #tpu.memory_space<vmem>>, vector<4x5xf32>,
    return
  }
  func.func @transform_0(%arg0: i32) -> (i32, i32) {
    %c0_i32 = arith.constant 0 : i32
    %c0_i32_0 = arith.constant 0 : i32
    return %c0_i32, %arg0 : i32, i32
  }
  func.func @transform_1(%arg0: i32) -> (i32, i32) {
    %c0_i32 = arith.constant 0 : i32
    %c0_i32_0 = arith.constant 0 : i32
    %c0_i32_1 = arith.constant 0 : i32
    return %c0_i32, %c0_i32_0 : i32, i32
  }
  func.func @transform_2(%arg0: i32) -> (i32, i32) {
    %c0_i32 = arith.constant 0 : i32
    %c0_i32_0 = arith.constant 0 : i32
    %c0_i32_1 = arith.constant 0 : i32
    return %c0_i32, %c0_i32_0 : i32, i32
  }
  func.func @transform_3(%arg0: i32) -> (i32, i32) {
    %c0_i32 = arith.constant 0 : i32
    %c0_i32_0 = arith.constant 0 : i32
    return %c0_i32, %arg0 : i32, i32
  }
}

</mosaic_0001>

<bundles_post_ra>
// kernel: activ_func.2
= control target key start
LH: loop header
LB: loop body
LE: loop exit
PB: predicated region body
PF: predicated region fallthrough
CT: control target
= control target key end

     0   :  { %8 = vsyncpa [#allocation3], 0  ;;  %s257_s0 = inlined_call_operand.hbm [shape: f32[4,8], index: 0, kind: input, shape index: {}]   ;;  %s258_s1 = inlined_call_operand.vmem [shape: f32[4,5], index: 1, kind: input, shape index: {}]   ;;  %s259_s2 = inlined_call_operand.hbm [shape: f32[4,5], index: 2, kind: input, shape index: {}]   ;;  %s260_s3 = inlined_call_operand.hbm [shape: f32[4,8], index: 3, kind: output, shape index: {}]  }
   0x1   :  { %9 = vsyncpa [#allocation6], 0 }
   0x2   :  { %10 = vsyncpa [#allocation4], 0  ;;  %s217_s12 = smov [#allocation2]   ;;  %s218_s14 = smov [#allocation5]  }
   0x3   :  { %s17_s13 = sshll.u32 %s217_s12, 4  ;;  %s29_s15 = sshll.u32 %s218_s14, 4  ;;  %s18_s13 = int_to_ptr.vmem [resolvable:$true] %s17_s13  ;;  %s30_s15 = int_to_ptr.vmem [resolvable:$true] %s29_s15 }
   0x4   :  { %s159_s16 = scalar_lea.vmem %s18_s13, 64  ;;  %p164_p1 = scmp.lt.s32.totalorder %s18_s13, %s18_s13 }
   0x5   :  { %p160_p0 = scmp.ne.s32.totalorder %s18_s13, %s159_s16  ;;  %p165_p2 = scmp.lt.s32.totalorder %s159_s16, %s159_s16 }
   0x7   :  { %p166_p3 = por %p165_p2, %p164_p1 }
   0x9   :  { %p167_p4 = pnand %p166_p3, %p160_p0 }
   0xb   :  { %170 = shalt.err (!%p167_p4)
}
   0xc   :  { %20 = dma.hbm_to_vmem [thread:$0]  %s257_s0, 64, %s18_s13, [#allocation3]  }
   0xd   :  { %s179_s19 = scalar_lea.vmem %s30_s15, 64  ;;  %p184_p6 = scmp.lt.s32.totalorder %s30_s15, %s30_s15 }
   0xe   :  { %p180_p5 = scmp.ne.s32.totalorder %s30_s15, %s179_s19  ;;  %p185_p7 = scmp.lt.s32.totalorder %s179_s19, %s179_s19 }
  0x10   :  { %p186_p8 = por %p185_p7, %p184_p6 }
  0x12   :  { %p187_p9 = pnand %p186_p8, %p180_p5 }
  0x14   :  { %190 = shalt.err (!%p187_p9)
}
  0x15   :  { %32 = dma.hbm_to_vmem [thread:$0]  %s259_s2, 64, %s30_s15, [#allocation6]  }
  0x16   :  { %211 = dma.done.wait [#allocation3], 64  }
  0x17   :  { %212 = vsyncadd [#allocation3], 4294967232 }
  0x18   :  { %213 = dma.done.wait [#allocation6], 64  }
  0x19   :  { %214 = vsyncadd [#allocation6], 4294967232  ;;  %v219_v0 = vmov 2   ;;  %v220_v1 = vmov 0   ;;  %v40_v2 = vld [vmem:[%s258_s1] sm:$0xf] }
  0x1a   :  { %142 = vset.pattern.permute.xlu1 %v219_v0  ;;  %140 = vset.pattern.permute.xlu0 %v220_v1  ;;  %v221_v3 = vmov 3   ;;  %v222_v4 = vmov 1   ;;  %v41_v5 = vld [vmem:[#allocation5] sm:$0xf]  ;;  %v223_v6 = vmov 4   ;;  %s224_s1 = smov [#allocation7]  }
  0x1b   :  { %73 = vperm.xlu1 %142, %v40_v2   ;;  %44 = vperm.xlu0 %140, %v40_v2   ;;  %v39_v8 = vld [vmem:[#allocation2] sm:$0xf]  ;;  %s122_s2 = sshll.u32 %s224_s1, 4  ;;  %vm114_vm0 = vcmask 60416   ;;  %s123_s2 = int_to_ptr.vmem [resolvable:$true] %s122_s2 }
  0x1c   :  { %s191_s23 = scalar_lea.vmem %s123_s2, 64  ;;  %p196_p11 = scmp.lt.s32.totalorder %s123_s2, %s123_s2 }
  0x1d   :  { %p192_p10 = scmp.ne.s32.totalorder %s123_s2, %s191_s23  ;;  %p197_p12 = scmp.lt.s32.totalorder %s191_s23, %s191_s23 }
  0x1f   :  { %143 = vset.pattern.permute.xlu1 %v221_v3  ;;  %141 = vset.pattern.permute.xlu0 %v222_v4  ;;  %p198_p13 = por %p197_p12, %p196_p11 }
  0x20   :  { %87 = vperm.xlu1 %143, %v40_v2   ;;  %59 = vperm.xlu0 %141, %v40_v2  }
  0x21   :  { %p199_p0 = pnand %p198_p13, %p192_p10 }
  0x24   :  { %144 = vset.pattern.permute.xlu1 %v223_v6  ;;  %145 = vset.pattern.permute.xlu0 %v220_v1 }
  0x25   :  { %101 = vperm.xlu1 %144, %v40_v2   ;;  %53 = vperm.xlu0 %145, %v41_v5  }
  0x29   :  { %146 = vset.pattern.permute.xlu1 %v222_v4  ;;  %148 = vset.pattern.permute.xlu0 %v221_v3 }
  0x2a   :  { %67 = vperm.xlu1 %146, %v41_v5   ;;  %95 = vperm.xlu0 %148, %v41_v5  }
  0x2e   :  { %147 = vset.pattern.permute.xlu1 %v219_v0  ;;  %150 = vset.pattern.permute.xlu0 %v223_v6 }
  0x2f   :  { %81 = vperm.xlu1 %147, %v41_v5  }
  0x33   :  { %149 = vset.pattern.permute.xlu1 %v223_v6 }
  0x34   :  { %109 = vperm.xlu1 %149, %v41_v5  }
  0x96   :  { %v74_v7 = vpop.permute.xlu1 %73  ;;  %v45_v9 = vpop.permute.xlu0 %44 }
  0x97   :  { %v47_v10 = vsub.f32 %v39_v8, %v45_v9  ;;  %v76_v15 = vsub.f32 %v39_v8, %v74_v7 }
  0x99   :  { %v48_v11 = vand.u32 2147483647, %v47_v10  ;;  %v77_v21 = vand.u32 2147483647, %v76_v15 }
  0x9b   :  { %v88_v12 = vpop.permute.xlu1 %87  ;;  %v60_v13 = vpop.permute.xlu0 %59  ;;  %v49_v17 = vsub.f32 1.0, %v48_v11  ;;  %v78_v27 = vsub.f32 1.0, %v77_v21 }
  0x9c   :  { %v62_v14 = vsub.f32 %v39_v8, %v60_v13  ;;  %v90_v18 = vsub.f32 %v39_v8, %v88_v12 }
  0x9d   :  { %v50_v23 = vmax.f32 %v49_v17, 0.0  ;;  %v79_v33 = vmax.f32 %v78_v27, 0.0 }
  0x9e   :  { %v63_v16 = vand.u32 2147483647, %v62_v14  ;;  %v91_v24 = vand.u32 2147483647, %v90_v18 }
  0xa0   :  { %v64_v19 = vsub.f32 1.0, %v63_v16  ;;  %v102_v20 = vpop.permute.xlu1 %101  ;;  %v54_v26 = vpop.permute.xlu0 %53  ;;  %v92_v30 = vsub.f32 1.0, %v91_v24 }
  0xa1   :  { %v104_v22 = vsub.f32 %v39_v8, %v102_v20  ;;  %v56_v31 = vmul.f32 %v54_v26, %v50_v23 }
  0xa2   :  { %v65_v25 = vmax.f32 %v64_v19, 0.0  ;;  %v93_v37 = vmax.f32 %v92_v30, 0.0 }
  0xa3   :  { %v105_v29 = vand.u32 2147483647, %v104_v22 }
  0xa5   :  { %v68_v28 = vpop.permute.xlu1 %67  ;;  %v106_v34 = vsub.f32 1.0, %v105_v29  ;;  %v96_v35 = vpop.permute.xlu0 %95 }
  0xa6   :  { %v70_v32 = vmul.f32 %v68_v28, %v65_v25  ;;  %v98_v40 = vmul.f32 %v96_v35, %v93_v37 }
  0xa7   :  { %v107_v42 = vmax.f32 %v106_v34, 0.0 }
  0xa8   :  { %v71_v38 = vadd.f32 %v70_v32, %v56_v31 }
  0xaa   :  { %v82_v36 = vpop.permute.xlu1 %81 }
  0xab   :  { %v84_v39 = vmul.f32 %v82_v36, %v79_v33 }
  0xad   :  { %v85_v41 = vadd.f32 %v84_v39, %v71_v38 }
  0xaf   :  { %v110_v43 = vpop.permute.xlu1 %109  ;;  %v99_v44 = vadd.f32 %v98_v40, %v85_v41 }
  0xb0   :  { %v112_v45 = vmul.f32 %v110_v43, %v107_v42 }
  0xb2   :  { %v113_v46 = vadd.f32 %v112_v45, %v99_v44 }
  0xb4   :  { %115 = vst.msk [vmem:[#allocation7] sm:$0xf] %vm114_vm0, %v113_v46 }
  0xb5   :  { %202 = shalt.err (!%p199_p0)
}
  0xb6   :  { %125 = dma.vmem_to_hbm [thread:$0]  %s123_s2, 64, %s260_s3, [#allocation4]  }
  0xb7   :  { %215 = dma.done.wait [#allocation4], 64  }
  0xb8   :  { %216 = vsyncadd [#allocation4], 4294967232 }
  0xb9   :  { %129 = vsyncpa [#allocation3], 1 }
  0xba   :  { %130 = vsyncpa [#allocation6], 1 }
  0xbb   :  { %131 = vsyncpa [#allocation4], 1 }

// kernel: activ_func.3
= control target key start
LH: loop header
LB: loop body
LE: loop exit
PB: predicated region body
PF: predicated region fallthrough
CT: control target
= control target key end

     0   :  { %v144_v1 = vmov 2   ;;  %v145_v2 = vmov 1   ;;  %s182_s0 = inlined_call_operand.vmem [shape: f32[4,5], index: 0, kind: input, shape index: {}, may-alias: {0,1}]   ;;  %s183_s1 = inlined_call_operand.vmem [shape: f32[4,5], index: 1, kind: input, shape index: {}, may-alias: {0,1}]   ;;  %s184_s2 = inlined_call_operand.vmem [shape: f32[4,5], index: 2, kind: input, shape index: {}]   ;;  %s185_s3 = inlined_call_operand.hbm [shape: f32[4,5], index: 3, kind: output, shape index: {}]  }
   0x1   :  { %v16_v0 = vld [vmem:[%s183_s1] sm:$0xf]  ;;  %114 = vset.pattern.permute.xlu1 %v144_v1  ;;  %112 = vset.pattern.permute.xlu0 %v145_v2 }
   0x2   :  { %49 = vperm.xlu1 %114, %v16_v0   ;;  %35 = vperm.xlu0 %112, %v16_v0  }
   0x3   :  { %8 = vsyncpa [#allocation3], 0  ;;  %v146_v3 = vmov 3   ;;  %v147_v4 = vmov 0   ;;  %v17_v5 = vld [vmem:[%s184_s2] sm:$0xf] }
   0x4   :  { %v148_v6 = vmov 4   ;;  %v15_v8 = vld [vmem:[%s182_s0] sm:$0xf]  ;;  %s149_s0 = smov [#allocation2]   ;;  %vm90_vm0 = vcmask 35840  }
   0x5   :  { %s98_s2 = sshll.u32 %s149_s0, 4  ;;  %s99_s2 = int_to_ptr.vmem [resolvable:$true] %s98_s2 }
   0x6   :  { %115 = vset.pattern.permute.xlu1 %v146_v3  ;;  %113 = vset.pattern.permute.xlu0 %v147_v4  ;;  %s122_s17 = scalar_lea.vmem %s99_s2, 64  ;;  %p127_p1 = scmp.lt.s32.totalorder %s99_s2, %s99_s2 }
   0x7   :  { %63 = vperm.xlu1 %115, %v16_v0   ;;  %20 = vperm.xlu0 %113, %v16_v0   ;;  %p123_p0 = scmp.ne.s32.totalorder %s99_s2, %s122_s17  ;;  %p128_p2 = scmp.lt.s32.totalorder %s122_s17, %s122_s17 }
   0x9   :  { %p129_p3 = por %p128_p2, %p127_p1 }
   0xb   :  { %116 = vset.pattern.permute.xlu1 %v148_v6  ;;  %29 = vperm.xlu0 %113, %v17_v5   ;;  %p130_p4 = pnand %p129_p3, %p123_p0 }
   0xc   :  { %77 = vperm.xlu1 %116, %v16_v0  }
   0xf   :  { %119 = vset.pattern.permute.xlu0 %v146_v3 }
  0x10   :  { %117 = vset.pattern.permute.xlu1 %v145_v2  ;;  %71 = vperm.xlu0 %119, %v17_v5  }
  0x11   :  { %43 = vperm.xlu1 %117, %v17_v5  }
  0x14   :  { %121 = vset.pattern.permute.xlu0 %v148_v6 }
  0x15   :  { %118 = vset.pattern.permute.xlu1 %v144_v1 }
  0x16   :  { %57 = vperm.xlu1 %118, %v17_v5  }
  0x1a   :  { %120 = vset.pattern.permute.xlu1 %v148_v6 }
  0x1b   :  { %85 = vperm.xlu1 %120, %v17_v5  }
  0x7d   :  { %v50_v7 = vpop.permute.xlu1 %49  ;;  %v36_v9 = vpop.permute.xlu0 %35 }
  0x7e   :  { %v38_v10 = vsub.f32 %v15_v8, %v36_v9  ;;  %v52_v15 = vsub.f32 %v15_v8, %v50_v7 }
  0x80   :  { %v39_v11 = vand.u32 2147483647, %v38_v10  ;;  %v53_v20 = vand.u32 2147483647, %v52_v15 }
  0x82   :  { %v64_v12 = vpop.permute.xlu1 %63  ;;  %v21_v13 = vpop.permute.xlu0 %20  ;;  %v40_v18 = vsub.f32 1.0, %v39_v11  ;;  %v54_v26 = vsub.f32 1.0, %v53_v20 }
  0x83   :  { %v23_v14 = vsub.f32 %v15_v8, %v21_v13  ;;  %v66_v16 = vsub.f32 %v15_v8, %v64_v12 }
  0x84   :  { %v41_v24 = vmax.f32 %v40_v18, 0.0  ;;  %v55_v32 = vmax.f32 %v54_v26, 0.0 }
  0x85   :  { %v24_v17 = vand.u32 2147483647, %v23_v14  ;;  %v67_v21 = vand.u32 2147483647, %v66_v16 }
  0x86   :  { %v30_v25 = vpop.permute.xlu0 %29 }
  0x87   :  { %v78_v19 = vpop.permute.xlu1 %77  ;;  %v25_v22 = vsub.f32 1.0, %v24_v17  ;;  %v68_v27 = vsub.f32 1.0, %v67_v21 }
  0x88   :  { %v80_v23 = vsub.f32 %v15_v8, %v78_v19 }
  0x89   :  { %v26_v28 = vmax.f32 %v25_v22, 0.0  ;;  %v69_v33 = vmax.f32 %v68_v27, 0.0 }
  0x8a   :  { %v81_v30 = vand.u32 2147483647, %v80_v23 }
  0x8b   :  { %v32_v34 = vmul.f32 %v30_v25, %v26_v28  ;;  %v72_v36 = vpop.permute.xlu0 %71 }
  0x8c   :  { %v44_v29 = vpop.permute.xlu1 %43  ;;  %v82_v35 = vsub.f32 1.0, %v81_v30  ;;  %v74_v40 = vmul.f32 %v72_v36, %v69_v33 }
  0x8d   :  { %v46_v31 = vmul.f32 %v44_v29, %v41_v24 }
  0x8e   :  { %v83_v42 = vmax.f32 %v82_v35, 0.0 }
  0x8f   :  { %v47_v38 = vadd.f32 %v46_v31, %v32_v34 }
  0x91   :  { %v58_v37 = vpop.permute.xlu1 %57 }
  0x92   :  { %v60_v39 = vmul.f32 %v58_v37, %v55_v32 }
  0x94   :  { %v61_v41 = vadd.f32 %v60_v39, %v47_v38 }
  0x96   :  { %v86_v43 = vpop.permute.xlu1 %85  ;;  %v75_v44 = vadd.f32 %v74_v40, %v61_v41 }
  0x97   :  { %v88_v45 = vmul.f32 %v86_v43, %v83_v42 }
  0x99   :  { %v89_v46 = vadd.f32 %v88_v45, %v75_v44 }
  0x9b   :  { %91 = vst.msk [vmem:[#allocation2] sm:$0xf] %vm90_vm0, %v89_v46 }
  0x9c   :  { %133 = shalt.err (!%p130_p4)
}
  0x9d   :  { %101 = dma.vmem_to_hbm [thread:$0]  %s99_s2, 64, %s185_s3, [#allocation3]  }
  0x9e   :  { %142 = dma.done.wait [#allocation3], 64  }
  0x9f   :  { %143 = vsyncadd [#allocation3], 4294967232 }
  0xa0   :  { %105 = vsyncpa [#allocation3], 1 }

</bundles_post_ra>
